<compile_context>
chip_gen: v5e
topology: v5e:2x2
jax: 0.10.0
libtpu: 0.0.40
codegen_flags: <defaults>
</compile_context>

<pallas_src>
import functools
import math

import jax
import jax.numpy as jnp
from jax.experimental import pallas as pl
from jax.experimental.pallas import tpu as pltpu


def _mha_kernel(x_ref, wqkv_ref, bqkv_ref, wo_ref, bo_ref, o_ref, *,
                heads, d_model, scale):
    # x_ref:    (block_bs, seq, d_model)   batch block
    # wqkv_ref: (d_model, 3*d_model)       [Wq.T | Wk.T | Wv.T]
    # bqkv_ref: (1, 3*d_model)
    # wo_ref:   (d_model, d_model)         Wo.T
    # bo_ref:   (1, d_model)
    # o_ref:    (block_bs, seq, d_model)
    block_bs, seq, _ = x_ref.shape
    d_k = d_model // heads
    m = block_bs * seq
    cdt = x_ref.dtype  # native compute dtype for MXU operands (bf16 stays bf16)

    x2 = x_ref[...].reshape(m, d_model)

    # Fused QKV projection: one wide (M, d_model) @ (d_model, 3*d_model) MXU dot.
    qkv = (jnp.dot(x2, wqkv_ref[...], preferred_element_type=jnp.float32)
           + bqkv_ref[...].astype(jnp.float32)).astype(cdt)       # (m, 3*d_model)

    # Attention core: loop over the small static `heads`, batched over the batch
    # elements of this block (single-batch-dim einsums lower cleanly on Mosaic).
    head_outs = []
    for h in range(heads):
        q = qkv[:, h * d_k:(h + 1) * d_k].reshape(block_bs, seq, d_k)
        k = qkv[:, d_model + h * d_k:d_model + (h + 1) * d_k].reshape(block_bs, seq, d_k)
        v = qkv[:, 2 * d_model + h * d_k:2 * d_model + (h + 1) * d_k].reshape(block_bs, seq, d_k)

        s = jnp.einsum('bqd,bkd->bqk', q, k,
                       preferred_element_type=jnp.float32) * scale      # (b, seq, seq) f32
        # TODO(synk): optional `mask` argument (masked_fill with -1e9) not implemented;
        # the reference forward defaults to mask=None.

        # numerically stable softmax (statistics kept in f32)
        s = s - jnp.max(s, axis=-1, keepdims=True)
        p = jnp.exp(s)
        denom = jnp.sum(p, axis=-1, keepdims=True)
        p = p * pl.reciprocal(denom, approx=True)
        # TODO(synk): nn.Dropout(p=0.1) on attention probabilities is a train-mode
        # stochastic op; this kernel implements the eval/inference path.

        attn = jnp.einsum('bqk,bkd->bqd', p.astype(cdt), v,
                          preferred_element_type=jnp.float32)            # (b, seq, d_k) f32
        head_outs.append(attn.reshape(m, d_k))

    # Heads concatenated back along the lane dim -> one fused output projection
    # with contraction K = d_model (instead of `heads` K=d_k dots).
    concat = jnp.concatenate(head_outs, axis=-1).astype(cdt)             # (m, d_model)
    out = (jnp.dot(concat, wo_ref[...], preferred_element_type=jnp.float32)
           + bo_ref[...].astype(jnp.float32))                            # (m, d_model) f32

    o_ref[...] = out.reshape(block_bs, seq, d_model).astype(o_ref.dtype)


def _pick_block_bs(bs, seq, d_model, budget_bytes=24 << 20):
    """Largest batch block that (a) divides bs, (b) fits a conservative VMEM budget,
    (c) leaves >= 2 grid steps whenever bs >= 2 (v7x has 2 TensorCores)."""
    def est_bytes(bb):
        rows = bb * seq
        # qkv + per-head scores/probs + concat/out intermediates (f32) + io blocks
        return 4 * (rows * 3 * d_model + 2 * bb * seq * seq + 3 * rows * d_model)

    best = 1
    for d in range(1, bs + 1):
        if bs % d != 0:
            continue
        if est_bytes(d) > budget_bytes:
            continue
        if bs // d >= 2 or bs == 1:
            best = d
    return best


def multi_head_attention(x, params, *, heads, mask=None):
    """x: (bs, seq, d_model). params: dict of PyTorch-convention Linear weights."""
    if mask is not None:
        raise NotImplementedError("mask is not supported (reference default is None)")

    bs, seq, d_model = x.shape
    assert d_model % heads == 0, "d_model must be divisible by heads"
    d_k = d_model // heads
    scale = 1.0 / math.sqrt(d_k)

    # Fuse weights once in the wrapper (and cast to the activation dtype once, so the
    # kernel never re-casts resident weights per grid step).
    wqkv = jnp.concatenate(
        [params["wq"].T, params["wk"].T, params["wv"].T], axis=1).astype(x.dtype)   # (d_model, 3*d_model)
    bqkv = jnp.concatenate(
        [params["bq"], params["bk"], params["bv"]]).reshape(1, 3 * d_model).astype(jnp.float32)
    wo = params["wo"].T.astype(x.dtype)                                              # (d_model, d_model)
    bo = params["bo"].reshape(1, d_model).astype(jnp.float32)

    block_bs = _pick_block_bs(bs, seq, d_model)
    grid = (bs // block_bs,)

    # VMEM budget: weights (possibly double-buffered) + double-buffered x/out blocks +
    # f32 intermediates, 1.5x headroom; clamped to [32 MiB, 48 MiB] (safe on v7x's
    # 64 MiB physical VMEM, also above the v5e default scoped limit).
    itemsize = jnp.dtype(x.dtype).itemsize
    m = block_bs * seq
    weight_bytes = itemsize * (4 * d_model * d_model) + 4 * (4 * d_model)
    io_bytes = 2 * 2 * itemsize * m * d_model
    work_bytes = 4 * (m * 3 * d_model + 2 * block_bs * seq * seq + 3 * m * d_model)
    vmem_limit = int(min(max(int(1.5 * (2 * weight_bytes + io_bytes + work_bytes)),
                             32 * 1024 * 1024),
                         48 * 1024 * 1024))

    kernel = functools.partial(_mha_kernel, heads=heads, d_model=d_model, scale=scale)

    out = pl.pallas_call(
        kernel,
        out_shape=jax.ShapeDtypeStruct((bs, seq, d_model), x.dtype),
        grid_spec=pltpu.PrefetchScalarGridSpec(
            num_scalar_prefetch=0,
            grid=grid,
            in_specs=[
                pl.BlockSpec((block_bs, seq, d_model), lambda b: (b, 0, 0)),     # x
                pl.BlockSpec((d_model, 3 * d_model), lambda b: (0, 0)),          # Wqkv
                pl.BlockSpec((1, 3 * d_model), lambda b: (0, 0)),                # bqkv
                pl.BlockSpec((d_model, d_model), lambda b: (0, 0)),              # Wo
                pl.BlockSpec((1, d_model), lambda b: (0, 0)),                    # bo
            ],
            out_specs=pl.BlockSpec((block_bs, seq, d_model), lambda b: (b, 0, 0)),
        ),
        compiler_params=pltpu.CompilerParams(
            dimension_semantics=("parallel",),
            vmem_limit_bytes=vmem_limit,
        ),
    )(x, wqkv, bqkv, wo, bo)

    return out


def mha_reference(x, params, *, heads, mask=None):
    """Pure-JAX port of the PyTorch forward (eval mode, dropout = identity)."""
    bs, seq, d_model = x.shape
    d_k = d_model // heads

    def linear(v, w, b):
        return jnp.matmul(v, w.T) + b

    q = linear(x, params["wq"], params["bq"]).reshape(bs, seq, heads, d_k).transpose(0, 2, 1, 3)
    k = linear(x, params["wk"], params["bk"]).reshape(bs, seq, heads, d_k).transpose(0, 2, 1, 3)
    v = linear(x, params["wv"], params["bv"]).reshape(bs, seq, heads, d_k).transpose(0, 2, 1, 3)

    scores = jnp.matmul(q, jnp.swapaxes(k, -2, -1)) / math.sqrt(d_k)
    if mask is not None:
        scores = jnp.where(mask[:, None] == 0, -1e9, scores)
    p = jax.nn.softmax(scores, axis=-1)
    o = jnp.matmul(p, v)
    concat = o.transpose(0, 2, 1, 3).reshape(bs, seq, d_model)
    return linear(concat, params["wo"], params["bo"])


if __name__ == "__main__":
    key = jax.random.PRNGKey(0)
    bs, seq, d_model, heads = 2, 8, 32, 4

    k_x, *wkeys = jax.random.split(key, 9)
    bound = 1.0 / math.sqrt(d_model)   # matches nn.Linear default init range

    def lin_init(kw, kb):
        w = jax.random.uniform(kw, (d_model, d_model), jnp.float32, -bound, bound)
        b = jax.random.uniform(kb, (d_model,), jnp.float32, -bound, bound)
        return w, b

    wq, bq = lin_init(wkeys[0], wkeys[1])
    wk, bk = lin_init(wkeys[2], wkeys[3])
    wv, bv = lin_init(wkeys[4], wkeys[5])
    wo, bo = lin_init(wkeys[6], wkeys[7])
    params = dict(wq=wq, bq=bq, wk=wk, bk=bk, wv=wv, bv=bv, wo=wo, bo=bo)

    x = jax.random.normal(k_x, (bs, seq, d_model), dtype=jnp.float32)

    out = multi_head_attention(x, params, heads=heads)
    out = jax.block_until_ready(out)

    ref = mha_reference(x, params, heads=heads)
    assert out.shape == x.shape
    assert not bool(jnp.isnan(out).any())
    # Tolerance accommodates MXU pass precision and the approximate (EUP) reciprocal
    # used for the softmax denominator.
    max_err = float(jnp.max(jnp.abs(out - ref)))
    assert bool(jnp.allclose(out, ref, atol=2e-2, rtol=2e-2)), max_err

    print("KERNEL_OK")
</pallas_src>

<mosaic_0001>
module attributes {stable_mosaic.version = 11 : i64} {
  func.func @_mha_kernel(%arg0: i32, %arg1: memref<1x8x32xf32, #tpu.memory_space<vmem>>, %arg2: memref<32x96xf32, #tpu.memory_space<vmem>>, %arg3: memref<1x96xf32, #tpu.memory_space<vmem>>, %arg4: memref<32x32xf32, #tpu.memory_space<vmem>>, %arg5: memref<1x32xf32, #tpu.memory_space<vmem>>, %arg6: memref<1x8x32xf32, #tpu.memory_space<vmem>>) attributes {dimension_semantics = [#tpu.dimension_semantics<parallel>], iteration_bounds = array<i64: 2>, scalar_prefetch = 0 : i64, scratch_operands = 0 : i64, tpu.core_type = #tpu.core_type<tc>, window_params = [{transform_indices = @transform_0, window_bounds = array<i64: 1, 8, 32>}, {pipeline_mode = #tpu.pipeline_mode<synchronous>, transform_indices = @transform_1, window_bounds = array<i64: 32, 96>}, {pipeline_mode = #tpu.pipeline_mode<synchronous>, transform_indices = @transform_2, window_bounds = array<i64: 1, 96>}, {pipeline_mode = #tpu.pipeline_mode<synchronous>, transform_indices = @transform_3, window_bounds = array<i64: 32, 32>}, {pipeline_mode = #tpu.pipeline_mode<synchronous>, transform_indices = @transform_4, window_bounds = array<i64: 1, 32>}, {transform_indices = @transform_5, window_bounds = array<i64: 1, 8, 32>}]} {
    %c0 = arith.constant 0 : index
    %c0_0 = arith.constant 0 : index
    %c0_1 = arith.constant 0 : index
    %0 = vector.load %arg1[%c0, %c0_0, %c0_1] : memref<1x8x32xf32, #tpu.memory_space<vmem>>, vector<1x8x32xf32>
    %1 = vector.shape_cast %0 : vector<1x8x32xf32> to vector<8x32xf32>
    %c0_2 = arith.constant 0 : index
    %c0_3 = arith.constant 0 : index
    %2 = vector.load %arg2[%c0_2, %c0_3] : memref<32x96xf32, #tpu.memory_space<vmem>>, vector<32x96xf32>
    %cst = arith.constant dense<0.000000e+00> : vector<8x96xf32>
    %3 = tpu.matmul %1, %2, %cst {dimension_numbers = #tpu.dot_dimension_numbers<[1], [0], [0], [1], [0, 0, 1, 1], [], []>} : vector<8x32xf32>, vector<32x96xf32>, vector<8x96xf32> -> vector<8x96xf32>
    %c0_4 = arith.constant 0 : index
    %c0_5 = arith.constant 0 : index
    %4 = vector.load %arg3[%c0_4, %c0_5] : memref<1x96xf32, #tpu.memory_space<vmem>>, vector<1x96xf32>
    %5 = vector.broadcast %4 : vector<1x96xf32> to vector<8x96xf32>
    %6 = arith.addf %3, %5 : vector<8x96xf32>
    %7 = vector.extract_strided_slice %6 {offsets = [0, 0], sizes = [8, 8], strides = [1, 1]} : vector<8x96xf32> to vector<8x8xf32>
    %8 = vector.shape_cast %7 : vector<8x8xf32> to vector<1x8x8xf32>
    %9 = vector.extract_strided_slice %6 {offsets = [0, 32], sizes = [8, 8], strides = [1, 1]} : vector<8x96xf32> to vector<8x8xf32>
    %10 = vector.shape_cast %9 : vector<8x8xf32> to vector<1x8x8xf32>
    %11 = vector.extract_strided_slice %6 {offsets = [0, 64], sizes = [8, 8], strides = [1, 1]} : vector<8x96xf32> to vector<8x8xf32>
    %12 = vector.shape_cast %11 : vector<8x8xf32> to vector<1x8x8xf32>
    "tpu.trace_start"() <{level = 10 : i32, message = "bqd,bkd->bqk"}> : () -> ()
    %cst_6 = arith.constant dense<0.000000e+00> : vector<1x8x8xf32>
    %13 = tpu.matmul %8, %10, %cst_6 {dimension_numbers = #tpu.dot_dimension_numbers<[2], [2], [1], [1], [0, 0, 0, 1, 1, 1], [0], [0]>} : vector<1x8x8xf32>, vector<1x8x8xf32>, vector<1x8x8xf32> -> vector<1x8x8xf32>
    "tpu.trace_stop"() : () -> ()
    %cst_7 = arith.constant 0.353553385 : f32
    %14 = vector.broadcast %cst_7 : f32 to vector<1x8x8xf32>
    %15 = arith.mulf %13, %14 : vector<1x8x8xf32>
    %cst_8 = arith.constant dense<0xFF800000> : vector<1x8xf32>
    %16 = vector.multi_reduction <maximumf>, %15, %cst_8 [2] : vector<1x8x8xf32> to vector<1x8xf32>
    %17 = vector.shape_cast %16 : vector<1x8xf32> to vector<1x8x1xf32>
    %18 = vector.broadcast %17 : vector<1x8x1xf32> to vector<1x8x8xf32>
    %19 = arith.subf %15, %18 : vector<1x8x8xf32>
    %20 = math.exp %19 : vector<1x8x8xf32>
    %cst_9 = arith.constant dense<0.000000e+00> : vector<1x8xf32>
    %21 = vector.multi_reduction <add>, %20, %cst_9 [2] : vector<1x8x8xf32> to vector<1x8xf32>
    %22 = vector.shape_cast %21 : vector<1x8xf32> to vector<1x8x1xf32>
    %23 = tpu.reciprocal %22 {approx = true} : vector<1x8x1xf32> -> vector<1x8x1xf32>
    %24 = vector.broadcast %23 : vector<1x8x1xf32> to vector<1x8x8xf32>
    %25 = arith.mulf %20, %24 : vector<1x8x8xf32>
    "tpu.trace_start"() <{level = 10 : i32, message = "bqk,bkd->bqd"}> : () -> ()
    %cst_10 = arith.constant dense<0.000000e+00> : vector<1x8x8xf32>
    %26 = tpu.matmul %25, %12, %cst_10 {dimension_numbers = #tpu.dot_dimension_numbers<[2], [1], [1], [2], [0, 0, 0, 1, 1, 2], [0], [0]>} : vector<1x8x8xf32>, vector<1x8x8xf32>, vector<1x8x8xf32> -> vector<1x8x8xf32>
    "tpu.trace_stop"() : () -> ()
    %27 = vector.shape_cast %26 : vector<1x8x8xf32> to vector<8x8xf32>
    %28 = vector.extract_strided_slice %6 {offsets = [0, 8], sizes = [8, 8], strides = [1, 1]} : vector<8x96xf32> to vector<8x8xf32>
    %29 = vector.shape_cast %28 : vector<8x8xf32> to vector<1x8x8xf32>
    %30 = vector.extract_strided_slice %6 {offsets = [0, 40], sizes = [8, 8], strides = [1, 1]} : vector<8x96xf32> to vector<8x8xf32>
    %31 = vector.shape_cast %30 : vector<8x8xf32> to vector<1x8x8xf32>
    %32 = vector.extract_strided_slice %6 {offsets = [0, 72], sizes = [8, 8], strides = [1, 1]} : vector<8x96xf32> to vector<8x8xf32>
    %33 = vector.shape_cast %32 : vector<8x8xf32> to vector<1x8x8xf32>
    "tpu.trace_start"() <{level = 10 : i32, message = "bqd,bkd->bqk"}> : () -> ()
    %cst_11 = arith.constant dense<0.000000e+00> : vector<1x8x8xf32>
    %34 = tpu.matmul %29, %31, %cst_11 {dimension_numbers = #tpu.dot_dimension_numbers<[2], [2], [1], [1], [0, 0, 0, 1, 1, 1], [0], [0]>} : vector<1x8x8xf32>, vector<1x8x8xf32>, vector<1x8x8xf32> -> vector<1x8x8xf32>
    "tpu.trace_stop"() : () -> ()
    %cst_12 = arith.constant 0.353553385 : f32
    %35 = vector.broadcast %cst_12 : f32 to vector<1x8x8xf32>
    %36 = arith.mulf %34, %35 : vector<1x8x8xf32>
    %cst_13 = arith.constant dense<0xFF800000> : vector<1x8xf32>
    %37 = vector.multi_reduction <maximumf>, %36, %cst_13 [2] : vector<1x8x8xf32> to vector<1x8xf32>
    %38 = vector.shape_cast %37 : vector<1x8xf32> to vector<1x8x1xf32>
    %39 = vector.broadcast %38 : vector<1x8x1xf32> to vector<1x8x8xf32>
    %40 = arith.subf %36, %39 : vector<1x8x8xf32>
    %41 = math.exp %40 : vector<1x8x8xf32>
    %cst_14 = arith.constant dense<0.000000e+00> : vector<1x8xf32>
    %42 = vector.multi_reduction <add>, %41, %cst_14 [2] : vector<1x8x8xf32> to vector<1x8xf32>
    %43 = vector.shape_cast %42 : vector<1x8xf32> to vector<1x8x1xf32>
    %44 = tpu.reciprocal %43 {approx = true} : vector<1x8x1xf32> -> vector<1x8x1xf32>
    %45 = vector.broadcast %44 : vector<1x8x1xf32> to vector<1x8x8xf32>
    %46 = arith.mulf %41, %45 : vector<1x8x8xf32>
    "tpu.trace_start"() <{level = 10 : i32, message = "bqk,bkd->bqd"}> : () -> ()
    %cst_15 = arith.constant dense<0.000000e+00> : vector<1x8x8xf32>
    %47 = tpu.matmul %46, %33, %cst_15 {dimension_numbers = #tpu.dot_dimension_numbers<[2], [1], [1], [2], [0, 0, 0, 1, 1, 2], [0], [0]>} : vector<1x8x8xf32>, vector<1x8x8xf32>, vector<1x8x8xf32> -> vector<1x8x8xf32>
    "tpu.trace_stop"() : () -> ()
    %48 = vector.shape_cast %47 : vector<1x8x8xf32> to vector<8x8xf32>
    %49 = vector.extract_strided_slice %6 {offsets = [0, 16], sizes = [8, 8], strides = [1, 1]} : vector<8x96xf32> to vector<8x8xf32>
    %50 = vector.shape_cast %49 : vector<8x8xf32> to vector<1x8x8xf32>
    %51 = vector.extract_strided_slice %6 {offsets = [0, 48], sizes = [8, 8], strides = [1, 1]} : vector<8x96xf32> to vector<8x8xf32>
    %52 = vector.shape_cast %51 : vector<8x8xf32> to vector<1x8x8xf32>
    %53 = vector.extract_strided_slice %6 {offsets = [0, 80], sizes = [8, 8], strides = [1, 1]} : vector<8x96xf32> to vector<8x8xf32>
    %54 = vector.shape_cast %53 : vector<8x8xf32> to vector<1x8x8xf32>
    "tpu.trace_start"() <{level = 10 : i32, message = "bqd,bkd->bqk"}> : () -> ()
    %cst_16 = arith.constant dense<0.000000e+00> : vector<1x8x8xf32>
    %55 = tpu.matmul %50, %52, %cst_16 {dimension_numbers = #tpu.dot_dimension_numbers<[2], [2], [1], [1], [0, 0, 0, 1, 1, 1], [0], [0]>} : vector<1x8x8xf32>, vector<1x8x8xf32>, vector<1x8x8xf32> -> vector<1x8x8xf32>
    "tpu.trace_stop"() : () -> ()
    %cst_17 = arith.constant 0.353553385 : f32
    %56 = vector.broadcast %cst_17 : f32 to vector<1x8x8xf32>
    %57 = arith.mulf %55, %56 : vector<1x8x8xf32>
    %cst_18 = arith.constant dense<0xFF800000> : vector<1x8xf32>
    %58 = vector.multi_reduction <maximumf>, %57, %cst_18 [2] : vector<1x8x8xf32> to vector<1x8xf32>
    %59 = vector.shape_cast %58 : vector<1x8xf32> to vector<1x8x1xf32>
    %60 = vector.broadcast %59 : vector<1x8x1xf32> to vector<1x8x8xf32>
    %61 = arith.subf %57, %60 : vector<1x8x8xf32>
    %62 = math.exp %61 : vector<1x8x8xf32>
    %cst_19 = arith.constant dense<0.000000e+00> : vector<1x8xf32>
    %63 = vector.multi_reduction <add>, %62, %cst_19 [2] : vector<1x8x8xf32> to vector<1x8xf32>
    %64 = vector.shape_cast %63 : vector<1x8xf32> to vector<1x8x1xf32>
    %65 = tpu.reciprocal %64 {approx = true} : vector<1x8x1xf32> -> vector<1x8x1xf32>
    %66 = vector.broadcast %65 : vector<1x8x1xf32> to vector<1x8x8xf32>
    %67 = arith.mulf %62, %66 : vector<1x8x8xf32>
    "tpu.trace_start"() <{level = 10 : i32, message = "bqk,bkd->bqd"}> : () -> ()
    %cst_20 = arith.constant dense<0.000000e+00> : vector<1x8x8xf32>
    %68 = tpu.matmul %67, %54, %cst_20 {dimension_numbers = #tpu.dot_dimension_numbers<[2], [1], [1], [2], [0, 0, 0, 1, 1, 2], [0], [0]>} : vector<1x8x8xf32>, vector<1x8x8xf32>, vector<1x8x8xf32> -> vector<1x8x8xf32>
    "tpu.trace_stop"() : () -> ()
    %69 = vector.shape_cast %68 : vector<1x8x8xf32> to vector<8x8xf32>
    %70 = vector.extract_strided_slice %6 {offsets = [0, 24], sizes = [8, 8], strides = [1, 1]} : vector<8x96xf32> to vector<8x8xf32>
    %71 = vector.shape_cast %70 : vector<8x8xf32> to vector<1x8x8xf32>
    %72 = vector.extract_strided_slice %6 {offsets = [0, 56], sizes = [8, 8], strides = [1, 1]} : vector<8x96xf32> to vector<8x8xf32>
    %73 = vector.shape_cast %72 : vector<8x8xf32> to vector<1x8x8xf32>
    %74 = vector.extract_strided_slice %6 {offsets = [0, 88], sizes = [8, 8], strides = [1, 1]} : vector<8x96xf32> to vector<8x8xf32>
    %75 = vector.shape_cast %74 : vector<8x8xf32> to vector<1x8x8xf32>
    "tpu.trace_start"() <{level = 10 : i32, message = "bqd,bkd->bqk"}> : () -> ()
    %cst_21 = arith.constant dense<0.000000e+00> : vector<1x8x8xf32>
    %76 = tpu.matmul %71, %73, %cst_21 {dimension_numbers = #tpu.dot_dimension_numbers<[2], [2], [1], [1], [0, 0, 0, 1, 1, 1], [0], [0]>} : vector<1x8x8xf32>, vector<1x8x8xf32>, vector<1x8x8xf32> -> vector<1x8x8xf32>
    "tpu.trace_stop"() : () -> ()
    %cst_22 = arith.constant 0.353553385 : f32
    %77 = vector.broadcast %cst_22 : f32 to vector<1x8x8xf32>
    %78 = arith.mulf %76, %77 : vector<1x8x8xf32>
    %cst_23 = arith.constant dense<0xFF800000> : vector<1x8xf32>
    %79 = vector.multi_reduction <maximumf>, %78, %cst_23 [2] : vector<1x8x8xf32> to vector<1x8xf32>
    %80 = vector.shape_cast %79 : vector<1x8xf32> to vector<1x8x1xf32>
    %81 = vector.broadcast %80 : vector<1x8x1xf32> to vector<1x8x8xf32>
    %82 = arith.subf %78, %81 : vector<1x8x8xf32>
    %83 = math.exp %82 : vector<1x8x8xf32>
    %cst_24 = arith.constant dense<0.000000e+00> : vector<1x8xf32>
    %84 = vector.multi_reduction <add>, %83, %cst_24 [2] : vector<1x8x8xf32> to vector<1x8xf32>
    %85 = vector.shape_cast %84 : vector<1x8xf32> to vector<1x8x1xf32>
    %86 = tpu.reciprocal %85 {approx = true} : vector<1x8x1xf32> -> vector<1x8x1xf32>
    %87 = vector.broadcast %86 : vector<1x8x1xf32> to vector<1x8x8xf32>
    %88 = arith.mulf %83, %87 : vector<1x8x8xf32>
    "tpu.trace_start"() <{level = 10 : i32, message = "bqk,bkd->bqd"}> : () -> ()
    %cst_25 = arith.constant dense<0.000000e+00> : vector<1x8x8xf32>
    %89 = tpu.matmul %88, %75, %cst_25 {dimension_numbers = #tpu.dot_dimension_numbers<[2], [1], [1], [2], [0, 0, 0, 1, 1, 2], [0], [0]>} : vector<1x8x8xf32>, vector<1x8x8xf32>, vector<1x8x8xf32> -> vector<1x8x8xf32>
    "tpu.trace_stop"() : () -> ()
    %90 = vector.shape_cast %89 : vector<1x8x8xf32> to vector<8x8xf32>
    %91 = tpu.concatenate %27, %48, %69, %90 in 1 : vector<8x8xf32>, vector<8x8xf32>, vector<8x8xf32>, vector<8x8xf32> -> vector<8x32xf32>
    %c0_26 = arith.constant 0 : index
    %c0_27 = arith.constant 0 : index
    %92 = vector.load %arg4[%c0_26, %c0_27] : memref<32x32xf32, #tpu.memory_space<vmem>>, vector<32x32xf32>
    %cst_28 = arith.constant dense<0.000000e+00> : vector<8x32xf32>
    %93 = tpu.matmul %91, %92, %cst_28 {dimension_numbers = #tpu.dot_dimension_numbers<[1], [0], [0], [1], [0, 0, 1, 1], [], []>} : vector<8x32xf32>, vector<32x32xf32>, vector<8x32xf32> -> vector<8x32xf32>
    %c0_29 = arith.constant 0 : index
    %c0_30 = arith.constant 0 : index
    %94 = vector.load %arg5[%c0_29, %c0_30] : memref<1x32xf32, #tpu.memory_space<vmem>>, vector<1x32xf32>
    %95 = vector.broadcast %94 : vector<1x32xf32> to vector<8x32xf32>
    %96 = arith.addf %93, %95 : vector<8x32xf32>
    %97 = vector.shape_cast %96 : vector<8x32xf32> to vector<1x8x32xf32>
    %c0_31 = arith.constant 0 : index
    %c0_32 = arith.constant 0 : index
    %c0_33 = arith.constant 0 : index
    %98 = vector.load %arg6[%c0_31, %c0_32, %c0_33] : memref<1x8x32xf32, #tpu.memory_space<vmem>>, vector<1x8x32xf32>
    tpu.vector_store %arg6[%c0_31, %c0_32, %c0_33], %97 {strides = array<i32>} : memref<1x8x32xf32, #tpu.memory_space<vmem>>, vector<1x8x32xf32>,
    return
  }
  func.func @transform_0(%arg0: i32) -> (i32, i32, i32) {
    %c0_i32 = arith.constant 0 : i32
    %c0_i32_0 = arith.constant 0 : i32
    %c0_i32_1 = arith.constant 0 : i32
    return %arg0, %c0_i32, %c0_i32_0 : i32, i32, i32
  }
  func.func @transform_1(%arg0: i32) -> (i32, i32) {
    %c0_i32 = arith.constant 0 : i32
    %c0_i32_0 = arith.constant 0 : i32
    %c0_i32_1 = arith.constant 0 : i32
    return %c0_i32, %c0_i32_0 : i32, i32
  }
  func.func @transform_2(%arg0: i32) -> (i32, i32) {
    %c0_i32 = arith.constant 0 : i32
    %c0_i32_0 = arith.constant 0 : i32
    %c0_i32_1 = arith.constant 0 : i32
    return %c0_i32, %c0_i32_0 : i32, i32
  }
  func.func @transform_3(%arg0: i32) -> (i32, i32) {
    %c0_i32 = arith.constant 0 : i32
    %c0_i32_0 = arith.constant 0 : i32
    %c0_i32_1 = arith.constant 0 : i32
    return %c0_i32, %c0_i32_0 : i32, i32
  }
  func.func @transform_4(%arg0: i32) -> (i32, i32) {
    %c0_i32 = arith.constant 0 : i32
    %c0_i32_0 = arith.constant 0 : i32
    %c0_i32_1 = arith.constant 0 : i32
    return %c0_i32, %c0_i32_0 : i32, i32
  }
  func.func @transform_5(%arg0: i32) -> (i32, i32, i32) {
    %c0_i32 = arith.constant 0 : i32
    %c0_i32_0 = arith.constant 0 : i32
    %c0_i32_1 = arith.constant 0 : i32
    return %arg0, %c0_i32, %c0_i32_0 : i32, i32, i32
  }
}

</mosaic_0001>

<bundles_post_ra>
// kernel: tpu_custom_call.1
= control target key start
LH: loop header
LB: loop body
LE: loop exit
PB: predicated region body
PF: predicated region fallthrough
CT: control target
= control target key end

     0   :  { %10 = vsyncpa [#allocation3], 0  ;;  %s1260_s0 = inlined_call_operand.hbm [shape: f32[2,8,32], index: 0, kind: input, shape index: {}]   ;;  %s1261_s1 = inlined_call_operand.hbm [shape: f32[32,96], index: 1, kind: input, shape index: {}]   ;;  %s1262_s2 = inlined_call_operand.vmem [shape: f32[1,96], index: 2, kind: input, shape index: {}]   ;;  %s1263_s3 = inlined_call_operand.hbm [shape: f32[32,32], index: 3, kind: input, shape index: {}]   ;;  %s1264_s4 = inlined_call_operand.vmem [shape: f32[1,32], index: 4, kind: input, shape index: {}]   ;;  %s1265_s5 = inlined_call_operand.hbm [shape: f32[2,8,32], index: 5, kind: output, shape index: {}]  }
   0x1   :  { %12 = vsyncpa [#allocation3 + $0x1], 0 }
   0x2   :  { %13 = vsyncpa [#allocation6], 0 }
   0x3   :  { %14 = vsyncpa [#allocation4], 0 }
   0x4   :  { %16 = vsyncpa [#allocation4 + $0x1], 0  ;;  %s1067_s18 = smov 0   ;;  %s1069_s19 = smov 0  }
   0x5   :  { %s1071_s20 = smov 0   ;;  %s1073_s21 = smov 0  }
   0x6 LB: > { %s174_s24 = sshll.u32 %s1261_s1, 4  ;;  %s1091_s25 = sadd.s32 4294967295, %s1017_s21   ;;  %s1017_s21 = sphi %s1073_s21, %s1276_s21   ;;  %s1013_s20 = sphi %s1071_s20, %s1275_s20   ;;  %s1009_s19 = sphi %s1069_s19, %s1274_s19   ;;  %s1005_s18 = sphi %s1067_s18, %s1273_s18   ;;  %s175_s24 = int_to_ptr.hbm [resolvable:$true] %s174_s24 }
   0x7   : > { %p727_p0 = scmp.ge.s32.totalorder %s1017_s21, 1  ;;  %p43_p1 = scmp.eq.s32.totalorder %s1091_s25, 0 }
   0x8   : > { %p163_p2 = scmp.lt.s32.totalorder %s1017_s21, 3  ;;  %s1019_s27 = smov [#allocation5]  }
   0x9   : > { %s176_s28 = sshll.u32 %s1019_s27, 4  ;;  %s191_s6 = sshll.u32 %s1263_s3, 4  ;;  %s177_s28 = int_to_ptr.vmem [resolvable:$true] %s176_s28  ;;  %s192_s6 = int_to_ptr.hbm [resolvable:$true] %s191_s6 }
   0xa   : > { %p1096_p3 = pnand %p727_p0, %p163_p2  ;;  %s1020_s7 = smov [#allocation7]  }
   0xb   : > { %s193_s8 = sshll.u32 %s1020_s7, 4  ;;  %s1021_s9 = smov 128   ;;  %s194_s8 = int_to_ptr.vmem [resolvable:$true] %s193_s8 }
   0xc   : > { %p768_p4 = pneg %p1096_p3  ;;  %s1022_s10 = smov 8  }
   0xd   : > { %s726_s11 = sadd.s32 4294967294, %s1017_s21   ;;  %s1110_s12 = sadd.s32 1, %s1017_s21  }
   0xe   : > { %p769_p6 = pnand %p768_p4, %p43_p1  ;;  %s26_s13 = ssub.s32 %s1017_s21, %s1110_s12 }
   0xf   : > { %s29_s14 = sadd.s32 1, %s1013_s20  ;;  %p27_p7 = scmp.eq.s32.totalorder %s26_s13, 0 }
  0x10   : > { %771 = dma.hbm_to_vmem [thread:$0]  (!%p769_p6), %s175_s24, 512, %s177_s28, [#allocation6], %s1021_s9, %s1021_s9, %s1022_s10  }
  0x11   : > { %774 = dma.hbm_to_vmem [thread:$0]  (!%p769_p6), %s192_s6, 512, %s194_s8, [#allocation6], %s1021_s9, %s1021_s9, %s1022_s10  }
  0x12   : > { %p36_p8 = scmp.ne.s32.totalorder %s1013_s20, %s1009_s19  ;;  %p37_p9 = scmp.eq.s32.totalorder %s1017_s21, 0 }
  0x13   : > { %p42_p10 = scmp.ne.s32.totalorder %s1009_s19, %s1005_s18  ;;  %p150_p13 = scmp.eq.s32.totalorder %s1091_s25, 1 }
  0x14   : > { %s1121_s15 = scalar_select %p27_p7, %s1013_s20, %s29_s14  }
  0x15   : > { %p1123_p11 = por %p37_p9, %p36_p8  ;;  %p1129_p12 = por %p43_p1, %p42_p10 }
  0x16   : > { %p156_p0 = scmp.eq.s32.totalorder %s726_s11, 1  ;;  %p785_p2 = scmp.lt.s32.totalorder %s1017_s21, 2 }
  0x17   : > { %s210_s22 = sand.u32 1, %s1013_s20   ;;  %p1136_p4 = por %p150_p13, %p36_p8 }
  0x18   : > { %p1140_p6 = por %p156_p0, %p42_p10  ;;  %s731_s27 = sshll.u32 %s210_s22, 3 }
  0x19   : > { %s732_s28 = sshll.u32 %s1017_s21, 3  ;;  %s214_s7 = scalar_lea.vmem [#allocation2], %s731_s27 }
  0x1a   : > { %s218_s6 = scalar_lea.hbm %s1260_s0, %s732_s28  ;;  %s222_s8 = sshll.u32 %s214_s7, 4  ;;  %s223_s8 = int_to_ptr.vmem [resolvable:$true] %s222_s8 }
  0x1b   : > { %s220_s9 = sshll.u32 %s218_s6, 4  ;;  %p1150_p7 = pnand %p785_p2, %p1123_p11  ;;  %s221_s9 = int_to_ptr.hbm [resolvable:$true] %s220_s9 }
  0x1c   : > { %s211_s11 = scalar_lea.sflag [#allocation3], %s210_s22  ;;  %s917_s13 = sshra.s32 %s221_s9, 4  ;;  %s918_s13 = int_to_ptr.hbm [resolvable:$true] %s917_s13 }
  0x1d   : > { %s919_s14 = scalar_lea.hbm %s918_s13, 8  ;;  %p921_p9 = pneg %p1150_p7 }
  0x1e   : > { %p920_p8 = scmp.ne.s32.totalorder %s918_s13, %s919_s14  ;;  %s924_s29 = scalar_lea.hbm %s1260_s0, 16 }
  0x1f   : > { %p925_p11 = scmp.lt.s32.totalorder %s918_s13, %s1260_s0  ;;  %p926_p0 = scmp.lt.s32.totalorder %s924_s29, %s919_s14 }
  0x20   : > { %p922_p10 = pnand %p921_p9, %p920_p8 }
  0x21   : > { %p927_p2 = por %p926_p0, %p925_p11 }
  0x22   : > { %p923_p13 = pneg %p922_p10 }
  0x24   : > { %p928_p5 = pnand %p927_p2, %p923_p13 }
  0x26   : > { %931 = shalt.err (!%p928_p5)
}
  0x27   : > { %778 = dma.hbm_to_vmem [thread:$0]  (!%p1150_p7), %s221_s9, 128, %s223_s8, %s211_s11  }
  0x28   : > { %231 = sbr.rel (%p1096_p3) target bundleno = 1102 (0x44e), region = 40  ;;  %s1167_s22 = sand.u32 (!%p1096_p3), 1, %s1009_s19  }
  0x29   : > { %s734_s6 = sshll.u32 (!%p1096_p3), %s1167_s22, 3  ;;  %s234_s7 = scalar_lea.sflag (!%p1096_p3), [#allocation3], %s1167_s22 }
  0x2a   : > { %s237_s13 = scalar_lea.vmem (!%p1096_p3), [#allocation2], %s734_s6 }
  0x2d   : > { %992 = dma.done.wait (%p1129_p12), %s234_s7, 128  }
  0x2e   : > { %994 = vsyncadd (%p1129_p12), %s234_s7, 4294967168 }
  0x2f   : > { %996 = dma.done.wait (%p43_p1), [#allocation6], 1024  }
  0x30   : > { %998 = vsyncadd (%p43_p1), [#allocation6], 4294966272  ;;  %v279_v0 = vld [vmem:[#allocation5 + $0x18] sm:$0xff]  ;;  %v278_v1 = vld [vmem:[#allocation5 + $0x10] sm:$0xff]  ;;  %vm284_vm0 = vcmask 261120   ;;  %s1023_s8 = smov 72  }
  0x31   : > { %300 = vmatpush.msra.mxu0 %v279_v0  ;;  %v277_v2 = vld [vmem:[#allocation5 + $0x8] sm:$0xff]  ;;  %v276_v3 = vld [vmem:[#allocation5] sm:$0xff]  ;;  %v275_v4 = vld [vmem:[%s237_s13] sm:$0xff]  ;;  %s1024_s9 = smov 120   ;;  %s1025_s10 = smov 96   ;;  %vm311_vm1 = vcmask 64512  }
  0x32   : > { %v839_v5 = vld [vmem:[%s1262_s2] ss:$0 sm:$0xff]  ;;  %s1026_s11 = smov 112   ;;  %s1027_s14 = smov 80   ;;  %vm585_vm2 = vcmask 130048   ;;  %vm587_vm3 = vcmask 195584  }
  0x33   : > { %301 = vmatpush.msra.mxu0 %v278_v1  ;;  %s1028_s27 = smov 88   ;;  %s1029_s28 = smov 104  }
  0x34   : > { %s1030_s29 = smov 64   ;;  %s1031_s30 = smov 40  }
  0x35   : > { %302 = vmatpush.msra.mxu0 %v277_v2  ;;  %s1032_s16 = smov 56   ;;  %s1033_s7 = smov 48  }
  0x36   : > { %s1034_s13 = smov 16   ;;  %s1035_s26 = smov 8  }
  0x37   : > { %303 = vmatpush.msra.mxu0 %v276_v3  ;;  %s1036_s17 = smov 24   ;;  %v592_v3 = vld [vmem:[#allocation7 + $0x18] sm:$0xff] }
  0x38   : > { %738 = vmatmul.msk.f32.vlgmr.msra.gmra.mxu0 %vm284_vm0, %v275_v4  ;;  %v591_v4 = vld [vmem:[#allocation7 + $0x10] sm:$0xff] }
  0xb5   : > { %v305_v6 = vpop.f32.mrf.mxu0 }
  0xb6   : > { %v1185_v7 = vadd.f32 %v839_v5, %v305_v6  ;;  %v590_v5 = vld [vmem:[#allocation7 + $0x8] sm:$0xff]  ;;  %v589_v6 = vld [vmem:[#allocation7] sm:$0xff] }
  0xb8   : > { %508 = vrot.lane.b32.xlu2 %v1185_v7, %s1023_s8  ;;  %374 = vrot.lane.b32.xlu1 %v1185_v7, %s1024_s9  ;;  %s753_s8 = sshll.u32 %s1091_s25, 3  ;;  %s622_s25 = scalar_lea.sflag [#allocation4], %s1167_s22 }
  0xb9   : > { %309 = vrot.lane.b32.xlu0 %v1185_v7, %s1025_s10 }
  0xc0   : > { %440 = vrot.lane.b32.xlu2 %v1185_v7, %s1026_s11  ;;  %442 = vrot.lane.b32.xlu1 %v1185_v7, %s1027_s14  ;;  %s632_s11 = scalar_lea.hbm %s1265_s5, %s753_s8 }
  0xc1   : > { %376 = vrot.lane.b32.xlu0 %v1185_v7, %s1028_s27 }
  0xc9   : > { %506 = vrot.lane.b32.xlu0 %v1185_v7, %s1029_s28  ;;  %s274_s28 = scalar_lea.vmem [#allocation8], %s734_s6  ;;  %s967_s6 = scalar_lea.hbm %s1265_s5, 16 }
 0x112   : > { %v509_v8 = vpop.permute.xlu2 %508 }
 0x113   : > { %748 = vmatpush.xpose.msk.msrb.mxu0 %vm311_vm1, %v509_v8 }
 0x11a   : > { %v441_v13 = vpop.permute.xlu2 %440 }
 0x12a   : > { %v375_v9 = vpop.permute.xlu1 %374 }
 0x12b   : > { %v310_v10 = vpop.permute.xlu0 %309 }
 0x12c   : > { %739 = vmatpush.xpose.msk.msra.mxu1 %vm311_vm1, %v310_v10 }
 0x12f   : > { %740 = vmatmul.msk.f32.vlgmr.msra.gmra.mxu1 %vm311_vm1, %v1185_v7 }
 0x132   : > { %v443_v11 = vpop.permute.xlu1 %442 }
 0x133   : > { %v377_v12 = vpop.permute.xlu0 %376  ;;  %745 = vmatpush.xpose.msk.msrb.mxu1 %vm311_vm1, %v443_v11 }
 0x134   : > { %742 = vmatpush.xpose.msk.msra.mxu3 %vm311_vm1, %v377_v12 }
 0x137   : > { %743 = vmatmul.msk.f32.vlgmr.msra.gmra.mxu3 %vm311_vm1, %v375_v9  ;;  %746 = vmatmul.msk.f32.vlgmr.msrb.gmra.mxu1 %vm311_vm1, %v441_v13  ;;  %v840_v13 = vld [vmem:[%s1264_s4] ss:$0 sm:$0xff] }
 0x138   : > { %612 = vmatpush.msra.mxu1 %v592_v3 }
 0x13a   : > { %613 = vmatpush.msra.mxu1 %v591_v4 }
 0x13b   : > { %v507_v14 = vpop.permute.xlu0 %506 }
 0x13c   : > { %749 = vmatmul.msk.f32.vlgmr.msrb.gmra.mxu0 %vm311_vm1, %v507_v14  ;;  %614 = vmatpush.msra.mxu1 %v590_v5 }
 0x13e   : > { %615 = vmatpush.msra.mxu1 %v589_v6 }
 0x1ac   : > { %v333_v15 = vpop.f32.mrf.mxu1 }
 0x1ad   : > { %v336_v16 = vmul.f32 0.35355338, %v333_v15 }
 0x1af   : > { %v337_v17 = vsel %vm311_vm1, %v336_v16, -inf }
 0x1b0   : > { %338 = vmax.xlane.f32.xlu1 %v337_v17 }
 0x1b4   : > { %v465_v18 = vpop.f32.mrf.mxu1 }
 0x1b5   : > { %v468_v19 = vmul.f32 0.35355338, %v465_v18 }
 0x1b7   : > { %v469_v20 = vsel %vm311_vm1, %v468_v19, -inf }
 0x1b8   : > { %470 = vmax.xlane.f32.xlu0 %v469_v20 }
 0x1b9   : > { %v531_v24 = vpop.f32.mrf.mxu0 }
 0x1ba   : > { %v399_v21 = vpop.f32.mrf.mxu3  ;;  %v534_v25 = vmul.f32 0.35355338, %v531_v24 }
 0x1bb   : > { %v402_v22 = vmul.f32 0.35355338, %v399_v21 }
 0x1bc   : > { %v535_v26 = vsel %vm311_vm1, %v534_v25, -inf }
 0x1bd   : > { %v403_v23 = vsel %vm311_vm1, %v402_v22, -inf }
 0x1be   : > { %404 = vmax.xlane.f32.xlu2 %v403_v23 }
 0x1c6   : > { %536 = vmax.xlane.f32.xlu2 %v535_v26 }
 0x1cc   : > { %348 = vrot.lane.b32.xlu0 %v1185_v7, %s1030_s29  ;;  %s634_s29 = sshll.u32 %s274_s28, 4  ;;  %s635_s29 = int_to_ptr.vmem [resolvable:$true] %s634_s29 }
 0x1d4   : > { %546 = vrot.lane.b32.xlu0 %v1185_v7, %s1031_s30  ;;  %s636_s30 = sshll.u32 %s632_s11, 4  ;;  %s637_s30 = int_to_ptr.hbm [resolvable:$true] %s636_s30 }
 0x223   : > { %v339_v27 = vpop.xlane.xlu1 %338 }
 0x224   : > { %v340_v28 = vsub.f32 %v336_v16, %v339_v27 }
 0x226   : > { %v341_v29 = vmul.f32 1.442695, %v340_v28 }
 0x228   : > { %841 = vpow2.f32 %v341_v29 }
 0x22b   : > { %v471_v30 = vpop.xlane.xlu0 %470 }
 0x22c   : > { %v472_v31 = vsub.f32 %v468_v19, %v471_v30 }
 0x22e   : > { %v842_v32 = vpop.eup %841  ;;  %v473_v33 = vmul.f32 1.442695, %v472_v31 }
 0x22f   : > { %v343_v34 = vsel %vm311_vm1, %v842_v32, 0.0 }
 0x230   : > { %843 = vpow2.f32 %v473_v33  ;;  %344 = vadd.xlane.f32.xlu1 %v343_v34 }
 0x231   : > { %v405_v35 = vpop.xlane.xlu2 %404 }
 0x232   : > { %v406_v40 = vsub.f32 %v402_v22, %v405_v35 }
 0x234   : > { %v407_v43 = vmul.f32 1.442695, %v406_v40 }
 0x236   : > { %v844_v36 = vpop.eup %843 }
 0x237   : > { %v475_v37 = vsel %vm311_vm1, %v844_v36, 0.0 }
 0x238   : > { %476 = vadd.xlane.f32.xlu1 %v475_v37 }
 0x239   : > { %v537_v38 = vpop.xlane.xlu2 %536 }
 0x23a   : > { %v538_v39 = vsub.f32 %v534_v25, %v537_v38 }
 0x23c   : > { %v539_v41 = vmul.f32 1.442695, %v538_v39 }
 0x23e   : > { %845 = vpow2.f32 %v539_v41  ;;  %v349_v42 = vpop.permute.xlu0 %348 }
 0x23f   : > { %369 = vmatpush.msra.mxu2 %v349_v42  ;;  %847 = vpow2.f32 %v407_v43 }
 0x244   : > { %v846_v44 = vpop.eup %845 }
 0x245   : > { %v541_v45 = vsel %vm311_vm1, %v846_v44, 0.0  ;;  %v848_v46 = vpop.eup %847 }
 0x246   : > { %542 = vadd.xlane.f32.xlu2 %v541_v45  ;;  %v409_v47 = vsel %vm311_vm1, %v848_v46, 0.0  ;;  %v547_v55 = vpop.permute.xlu0 %546 }
 0x24e   : > { %410 = vadd.xlane.f32.xlu2 %v409_v47 }
 0x251   : > { %414 = vrot.lane.b32.xlu1 %v1185_v7, %s1032_s16  ;;  %s961_s16 = sshra.s32 %s637_s30, 4  ;;  %s962_s16 = int_to_ptr.hbm [resolvable:$true] %s961_s16 }
 0x252   : > { %p968_p12 = scmp.lt.s32.totalorder %s962_s16, %s1265_s5 }
 0x266   : > { %480 = vrot.lane.b32.xlu2 %v1185_v7, %s1033_s7  ;;  %s963_s7 = scalar_lea.hbm %s962_s16, 8 }
 0x267   : > { %p964_p1 = scmp.ne.s32.totalorder %s962_s16, %s963_s7  ;;  %p969_p7 = scmp.lt.s32.totalorder %s967_s6, %s963_s7 }
 0x269   : > { %p965_p3 = pnand %p964_p1, %p1136_p4  ;;  %p970_p8 = por %p969_p7, %p968_p12 }
 0x26b   : > { %p966_p5 = pneg %p965_p3 }
 0x26d   : > { %p971_p9 = pnand %p970_p8, %p966_p5 }
 0x2a3   : > { %v345_v48 = vpop.xlane.xlu1 %344 }
 0x2a4   : > { %849 = vrcp.f32 %v345_v48 }
 0x2aa   : > { %v850_v49 = vpop.eup %849 }
 0x2ab   : > { %v347_v50 = vmul.f32 %v850_v49, %v842_v32  ;;  %v477_v52 = vpop.xlane.xlu1 %476 }
 0x2ac   : > { %851 = vrcp.f32 %v477_v52 }
 0x2ad   : > { %741 = vmatmul.msk.f32.vlgmr.msra.gmra.mxu2 %vm311_vm1, %v347_v50 }
 0x2b2   : > { %v852_v56 = vpop.eup %851 }
 0x2b3   : > { %v479_v60 = vmul.f32 %v852_v56, %v844_v36 }
 0x2b9   : > { %v543_v51 = vpop.xlane.xlu2 %542 }
 0x2c1   : > { %v411_v53 = vpop.xlane.xlu2 %410 }
 0x2c2   : > { %853 = vrcp.f32 %v411_v53 }
 0x2c3   : > { %v415_v54 = vpop.permute.xlu1 %414  ;;  %855 = vrcp.f32 %v543_v51 }
 0x2c4   : > { %435 = vmatpush.msrb.mxu2 %v415_v54 }
 0x2c6   : > { %567 = vmatpush.msra.mxu2 %v547_v55 }
 0x2c8   : > { %v854_v57 = vpop.eup %853 }
 0x2c9   : > { %v481_v58 = vpop.permute.xlu2 %480  ;;  %v413_v59 = vmul.f32 %v854_v57, %v848_v46  ;;  %v856_v61 = vpop.eup %855 }
 0x2ca   : > { %501 = vmatpush.msrb.mxu3 %v481_v58  ;;  %v545_v62 = vmul.f32 %v856_v61, %v846_v44 }
 0x2cb   : > { %744 = vmatmul.msk.f32.vlgmr.msrb.gmra.mxu2 %vm311_vm1, %v413_v59  ;;  %747 = vmatmul.msk.f32.vlgmr.msrb.gmra.mxu3 %vm311_vm1, %v479_v60 }
 0x2d3   : > { %750 = vmatmul.msk.f32.vlgmr.msra.gmra.mxu2 %vm311_vm1, %v545_v62 }
 0x330   : > { %v371_v63 = vpop.f32.mrf.mxu2 }
 0x34e   : > { %v437_v0 = vpop.f32.mrf.mxu2  ;;  %v503_v1 = vpop.f32.mrf.mxu3 }
 0x34f   : > { %577 = vrot.lane.b32.xlu1 %v503_v1, %s1034_s13  ;;  %573 = vrot.lane.b32.xlu0 %v437_v0, %s1035_s26 }
 0x356   : > { %v569_v2 = vpop.f32.mrf.mxu2 }
 0x357   : > { %581 = vrot.lane.b32.xlu0 %v569_v2, %s1036_s17 }
 0x3c1   : > { %v574_v7 = vpop.permute.xlu0 %573  ;;  %v578_v8 = vpop.permute.xlu1 %577 }
 0x3c2   : > { %v584_v9 = vsel %vm311_vm1, %v371_v63, %v574_v7 }
 0x3c3   : > { %v586_v10 = vsel %vm585_vm2, %v584_v9, %v578_v8 }
 0x3c9   : > { %v582_v11 = vpop.permute.xlu0 %581 }
 0x3ca   : > { %v588_v12 = vsel %vm587_vm3, %v586_v10, %v582_v11 }
 0x3cb   : > { %751 = vmatmul.msk.f32.vlgmr.msra.gmra.mxu1 %vm284_vm0, %v588_v12 }
 0x448   : > { %v617_v14 = vpop.f32.mrf.mxu1 }
 0x449   : > { %v618_v15 = vadd.f32 %v840_v13, %v617_v14 }
 0x44b   : > { %620 = vst.msk [vmem:[%s274_s28] sm:$0xff] %vm284_vm0, %v618_v15 }
 0x44c   : > { %974 = shalt.err (!%p971_p9)
}
 0x44d   : > { %766 = dma.vmem_to_hbm [thread:$0]  (%p1136_p4), %s635_s29, 128, %s637_s30, %s622_s25  }
 0x44e PF: > { %s648_s22 = sand.u32 1, %s1005_s18   ;;  %p1272_p10 = scmp.ge.s32.totalorder %s1017_s21, 2 }
 0x44f   : > { %s649_s9 = scalar_lea.sflag [#allocation4], %s648_s22 }
 0x450   : > { %p780_p13 = pnand %p1272_p10, %p1140_p6 }
 0x452   : > { %p781_p11 = pneg %p780_p13 }
 0x454   : > { %1000 = dma.done.wait (%p781_p11), %s649_s9, 128  }
 0x455   : > { %1002 = vsyncadd (%p781_p11), %s649_s9, 4294967168  ;;  %p19_p0 = scmp.ge.s32.totalorder %s1110_s12, 4   ;;  %s1273_s18 = smov %s1009_s19 }
 0x456   : > { %s1274_s19 = smov %s1013_s20  ;;  %s1275_s20 = smov %s1121_s15 }
 0x457   : > { %s1276_s21 = smov %s1110_s12  ;;  %21 = sbr.rel (!%p19_p0) target bundleno = 6 (0x6), region = 93 }
 0x45c   :  { %655 = vsyncpa [#allocation3], 1 }
 0x45d   :  { %657 = vsyncpa [#allocation3 + $0x1], 1 }
 0x45e   :  { %658 = vsyncpa [#allocation6], 1 }
 0x45f   :  { %659 = vsyncpa [#allocation4], 1 }
 0x460   :  { %661 = vsyncpa [#allocation4 + $0x1], 1 }

</bundles_post_ra>
